<compile_context>
chip_gen: v7x
topology: tpu7x:2x2x1
jax: 0.10.0
libtpu: 0.0.40
codegen_flags: <defaults>
</compile_context>

<pallas_src>
import jax
import jax.numpy as jnp
from jax.experimental import pallas as pl
from jax.experimental.pallas import tpu as pltpu

SAFE_LOG_EPS = 1e-6
BN_EPS = 1e-5


def shallow_convnet_kernel(x_ref, w_ref, b_ref, pool_ref, wc_ref, bc_ref, o_ref):
    # x_ref:    (Bt, T, C)         raw input tile (batch-tiled only, read once from HBM)
    # w_ref:    (Kt*C, F)          temporal (x) spatial conv weight with BN scale folded in
    # b_ref:    (1, F)             folded conv + BN bias
    # pool_ref: (P, T1)            average-pooling matrix shared across the batch
    # wc_ref:   (P*F, n_classes)   flattened classifier weight (row order p*F + f)
    # bc_ref:   (1, n_classes)     classifier bias
    # o_ref:    (Bt, n_classes)    output log-probabilities
    n_bt, t_len, n_ch = x_ref.shape
    jk, n_f = w_ref.shape
    kt = jk // n_ch
    t1 = t_len - kt + 1
    n_pool = pool_ref.shape[0]

    # ---- in-kernel im2col: the Kt-fold data replication stays in VMEM, HBM traffic is 1x ----
    x = x_ref[...]                                                          # (Bt, T, C)
    patches = jnp.concatenate([x[:, k:k + t1, :] for k in range(kt)],
                              axis=-1)                                      # (Bt, T1, Kt*C)
    patches = patches.reshape(n_bt * t1, jk)                                # (Bt*T1, Kt*C)

    # ---- temporal + spatial conv + BN (all folded) as ONE MXU matmul, then square ----
    z = jnp.dot(patches, w_ref[...],
                preferred_element_type=jnp.float32) + b_ref[...]            # (Bt*T1, F)
    z = z * z

    # ---- AvgPool2d over time: Bt-batched (P,T1)x(T1,F) matmul (no block-diagonal waste) ----
    z3 = z.reshape(n_bt, t1, n_f)                                           # (Bt, T1, F)
    pool_b = jnp.broadcast_to(pool_ref[...][None, :, :], (n_bt, n_pool, t1))
    pooled = jnp.einsum('bpt,btf->bpf', pool_b, z3,
                        preferred_element_type=jnp.float32)                 # (Bt, P, F)

    # ---- safe_log; Dropout in eval mode is identity ----
    feat = jnp.log(jnp.maximum(pooled, SAFE_LOG_EPS))

    # ---- pack (p, f) onto lanes -> (Bt, P*F); classifier as one matmul ----
    feat_flat = jnp.concatenate([feat[:, p, :] for p in range(n_pool)],
                                axis=-1)                                    # (Bt, P*F)
    logits = jnp.dot(feat_flat, wc_ref[...],
                     preferred_element_type=jnp.float32) + bc_ref[...]      # (Bt, n_classes)

    # ---- LogSoftmax over classes ----
    m = jnp.max(logits, axis=-1, keepdims=True)
    s = logits - m
    lse = jnp.log(jnp.sum(jnp.exp(s), axis=-1, keepdims=True))
    o_ref[...] = s - lse


def make_pool_matrix(t1, pool_size, pool_stride):
    n_pool = (t1 - pool_size) // pool_stride + 1
    t_idx = jnp.arange(t1)[None, :]
    start = (jnp.arange(n_pool) * pool_stride)[:, None]
    mask = (t_idx >= start) & (t_idx < start + pool_size)
    return mask.astype(jnp.float32) / float(pool_size)


def _pick_batch_tile(batch):
    # Batch tile fills sublanes / amortizes the ~0.35us grid-step overhead; 16 keeps the
    # (Bt*T1, Kt*C) im2col intermediate comfortably inside VMEM at realistic model sizes.
    if batch <= 16:
        return batch
    for bt in (16, 8):
        if batch % bt == 0:
            return bt
    return batch


def shallow_convnet_forward(x_btc, params, *, pool_size_time, pool_stride_time,
                            batch_tile=None):
    B, T, C = x_btc.shape
    w1t, w2k = params["w1t"], params["w2k"]
    Kt, F = w1t.shape
    T1 = T - Kt + 1
    P = (T1 - pool_size_time) // pool_stride_time + 1
    n_classes = params["wc"].shape[-1]
    J = Kt * C

    bt = _pick_batch_tile(B) if batch_tile is None else batch_tile
    assert B % bt == 0, "batch tile must divide batch"

    # ---- wrapper-side precomputation (tiny, plain XLA; weights only, no activations) ----
    # Fold temporal (x) spatial conv and eval-mode BatchNorm into one weight/bias.
    # Column/row order j = k*C + c matches the in-kernel im2col concat order.
    w_comb = jnp.einsum("kg,cgf->kcf", w1t, w2k).reshape(J, F)                # (Kt*C, F)
    b_comb = jnp.einsum("g,cgf->f", params["b1"].reshape(-1), w2k)            # (F,)
    bn_scale = params["bn_scale"].reshape(F)
    bn_shift = params["bn_shift"].reshape(F)
    w_fold = w_comb * bn_scale[None, :]
    b_fold = (b_comb * bn_scale + bn_shift).reshape(1, F)

    pool_mat = make_pool_matrix(T1, pool_size_time, pool_stride_time)         # (P, T1)
    wc_flat = params["wc"].reshape(P * F, n_classes)   # row order (p, f) matches feat_flat
    bc = params["bc"].reshape(1, n_classes)

    grid = (B // bt,)
    out = pl.pallas_call(
        shallow_convnet_kernel,
        out_shape=jax.ShapeDtypeStruct((B, n_classes), jnp.float32),
        grid_spec=pltpu.PrefetchScalarGridSpec(
            num_scalar_prefetch=0,
            grid=grid,
            in_specs=[
                pl.BlockSpec((bt, T, C), lambda i: (i, 0, 0)),       # raw input tile
                pl.BlockSpec((J, F), lambda i: (0, 0)),              # folded conv weight
                pl.BlockSpec((1, F), lambda i: (0, 0)),              # folded conv bias
                pl.BlockSpec((P, T1), lambda i: (0, 0)),             # pooling matrix
                pl.BlockSpec((P * F, n_classes), lambda i: (0, 0)),  # classifier weight
                pl.BlockSpec((1, n_classes), lambda i: (0, 0)),      # classifier bias
            ],
            out_specs=pl.BlockSpec((bt, n_classes), lambda i: (i, 0)),
        ),
        compiler_params=pltpu.CompilerParams(dimension_semantics=("parallel",)),
    )(x_btc, w_fold, b_fold, pool_mat, wc_flat, bc)
    return out


def init_params(key, *, n_timepoints, n_channels, n_classes, n_filters,
                filter_size_time, pool_size_time, pool_stride_time):
    """Deterministic parameter init mirroring the PyTorch module's __init__."""
    F, Kt, C = n_filters, filter_size_time, n_channels
    T1 = n_timepoints - Kt + 1
    P = (T1 - pool_size_time) // pool_stride_time + 1
    k1, k2, k3, k4, k5 = jax.random.split(key, 5)

    def xavier_uniform(k, shape):
        out_ch, in_ch, kh, kw = shape
        fan_in, fan_out = in_ch * kh * kw, out_ch * kh * kw
        bound = (6.0 / (fan_in + fan_out)) ** 0.5
        return jax.random.uniform(k, shape, jnp.float32, -bound, bound)

    w1 = xavier_uniform(k1, (F, 1, Kt, 1))                  # temporal conv weight
    b1 = jax.random.uniform(k2, (F,), jnp.float32, -0.1, 0.1)
    w2 = xavier_uniform(k3, (F, F, 1, C))                   # spatial conv weight (no bias)

    # BatchNorm2d: weight=1, bias=0; eval-mode running stats mean=0, var=1.
    gamma = jnp.ones((F,), jnp.float32)
    beta = jnp.zeros((F,), jnp.float32)
    running_mean = jnp.zeros((F,), jnp.float32)
    running_var = jnp.ones((F,), jnp.float32)
    bn_scale = gamma / jnp.sqrt(running_var + BN_EPS)
    bn_shift = beta - running_mean * bn_scale

    # Classifier Conv2dNormWeight(F, n_classes, (P, 1), max_norm=0.5): renorm along dim 0.
    wc_t = xavier_uniform(k4, (n_classes, F, P, 1))
    norms = jnp.sqrt(jnp.sum(wc_t ** 2, axis=(1, 2, 3), keepdims=True))
    wc_t = wc_t * jnp.minimum(1.0, 0.5 / (norms + 1e-7))
    bc = jax.random.uniform(k5, (n_classes,), jnp.float32, -0.1, 0.1)

    return dict(
        w1t=jnp.transpose(w1[:, 0, :, 0]),                  # (Kt, F)
        b1=b1.reshape(1, F),
        w2k=jnp.transpose(w2[:, :, 0, :], (2, 1, 0)),       # (C, F_in, F_out)
        bn_scale=bn_scale.reshape(1, F),
        bn_shift=bn_shift.reshape(1, F),
        wc=jnp.transpose(wc_t[:, :, :, 0], (2, 1, 0)),      # (P, F, n_classes)
        bc=bc.reshape(1, n_classes),
    )


def ref_forward(x_btc, params, *, pool_size_time, pool_stride_time):
    """Pure-JAX reference of the same forward pass (for correctness check)."""
    B, T, C = x_btc.shape
    w1t, w2k = params["w1t"], params["w2k"]
    Kt, F = w1t.shape
    T1 = T - Kt + 1
    patches = jnp.stack([x_btc[:, k:k + T1, :] for k in range(Kt)], axis=2)  # (B,T1,Kt,C)
    out1 = jnp.einsum("btkc,kf->btcf", patches, w1t) + params["b1"].reshape(1, 1, 1, F)
    out2 = jnp.einsum("btcg,cgf->btf", out1, w2k)
    z = out2 * params["bn_scale"].reshape(1, 1, F) + params["bn_shift"].reshape(1, 1, F)
    z = z * z
    pool_mat = make_pool_matrix(T1, pool_size_time, pool_stride_time)
    pooled = jnp.einsum("pt,btf->bpf", pool_mat, z)
    feat = jnp.log(jnp.maximum(pooled, SAFE_LOG_EPS))
    logits = jnp.einsum("bpf,pfc->bc", feat, params["wc"]) + params["bc"]
    return jax.nn.log_softmax(logits, axis=-1)


if __name__ == "__main__":
    # Small but consistent hyperparameters for the module.
    n_timepoints, n_channels, n_classes = 64, 4, 4
    n_filters, filter_size_time = 8, 9
    pool_size_time, pool_stride_time = 16, 8
    B = 2

    key = jax.random.PRNGKey(0)
    kx, kp = jax.random.split(key)
    # PyTorch-style NCHW input: (B, 1, n_timepoints, n_channels)
    x_nchw = jax.random.normal(kx, (B, 1, n_timepoints, n_channels), jnp.float32)
    params = init_params(
        kp, n_timepoints=n_timepoints, n_channels=n_channels, n_classes=n_classes,
        n_filters=n_filters, filter_size_time=filter_size_time,
        pool_size_time=pool_size_time, pool_stride_time=pool_stride_time)

    x_btc = x_nchw[:, 0, :, :]   # squeeze singleton input channel -> (B, T, C)

    out = shallow_convnet_forward(
        x_btc, params, pool_size_time=pool_size_time, pool_stride_time=pool_stride_time)
    out = jax.block_until_ready(out)

    ref = ref_forward(
        x_btc, params, pool_size_time=pool_size_time, pool_stride_time=pool_stride_time)

    assert out.shape == (B, n_classes), out.shape
    assert out.dtype == jnp.float32
    assert jnp.allclose(out, ref, atol=1e-4, rtol=1e-4), (out, ref)
    print("KERNEL_OK")
</pallas_src>

<mosaic_0001>
module attributes {stable_mosaic.version = 11 : i64} {
  func.func @shallow_convnet_kernel(%arg0: i32, %arg1: memref<2x64x4xf32, #tpu.memory_space<vmem>>, %arg2: memref<36x8xf32, #tpu.memory_space<vmem>>, %arg3: memref<1x8xf32, #tpu.memory_space<vmem>>, %arg4: memref<6x56xf32, #tpu.memory_space<vmem>>, %arg5: memref<48x4xf32, #tpu.memory_space<vmem>>, %arg6: memref<1x4xf32, #tpu.memory_space<vmem>>, %arg7: memref<2x4xf32, #tpu.memory_space<vmem>>) attributes {dimension_semantics = [#tpu.dimension_semantics<parallel>], iteration_bounds = array<i64: 1>, scalar_prefetch = 0 : i64, scratch_operands = 0 : i64, tpu.core_type = #tpu.core_type<tc>, window_params = [{transform_indices = @transform_0, window_bounds = array<i64: 2, 64, 4>}, {pipeline_mode = #tpu.pipeline_mode<synchronous>, transform_indices = @transform_1, window_bounds = array<i64: 36, 8>}, {pipeline_mode = #tpu.pipeline_mode<synchronous>, transform_indices = @transform_2, window_bounds = array<i64: 1, 8>}, {pipeline_mode = #tpu.pipeline_mode<synchronous>, transform_indices = @transform_3, window_bounds = array<i64: 6, 56>}, {pipeline_mode = #tpu.pipeline_mode<synchronous>, transform_indices = @transform_4, window_bounds = array<i64: 48, 4>}, {pipeline_mode = #tpu.pipeline_mode<synchronous>, transform_indices = @transform_5, window_bounds = array<i64: 1, 4>}, {transform_indices = @transform_6, window_bounds = array<i64: 2, 4>}]} {
    %c0 = arith.constant 0 : index
    %c0_0 = arith.constant 0 : index
    %c0_1 = arith.constant 0 : index
    %0 = vector.load %arg1[%c0, %c0_0, %c0_1] : memref<2x64x4xf32, #tpu.memory_space<vmem>>, vector<2x64x4xf32>
    %1 = vector.extract_strided_slice %0 {offsets = [0, 0, 0], sizes = [2, 56, 4], strides = [1, 1, 1]} : vector<2x64x4xf32> to vector<2x56x4xf32>
    %2 = vector.extract_strided_slice %0 {offsets = [0, 1, 0], sizes = [2, 56, 4], strides = [1, 1, 1]} : vector<2x64x4xf32> to vector<2x56x4xf32>
    %3 = vector.extract_strided_slice %0 {offsets = [0, 2, 0], sizes = [2, 56, 4], strides = [1, 1, 1]} : vector<2x64x4xf32> to vector<2x56x4xf32>
    %4 = vector.extract_strided_slice %0 {offsets = [0, 3, 0], sizes = [2, 56, 4], strides = [1, 1, 1]} : vector<2x64x4xf32> to vector<2x56x4xf32>
    %5 = vector.extract_strided_slice %0 {offsets = [0, 4, 0], sizes = [2, 56, 4], strides = [1, 1, 1]} : vector<2x64x4xf32> to vector<2x56x4xf32>
    %6 = vector.extract_strided_slice %0 {offsets = [0, 5, 0], sizes = [2, 56, 4], strides = [1, 1, 1]} : vector<2x64x4xf32> to vector<2x56x4xf32>
    %7 = vector.extract_strided_slice %0 {offsets = [0, 6, 0], sizes = [2, 56, 4], strides = [1, 1, 1]} : vector<2x64x4xf32> to vector<2x56x4xf32>
    %8 = vector.extract_strided_slice %0 {offsets = [0, 7, 0], sizes = [2, 56, 4], strides = [1, 1, 1]} : vector<2x64x4xf32> to vector<2x56x4xf32>
    %9 = vector.extract_strided_slice %0 {offsets = [0, 8, 0], sizes = [2, 56, 4], strides = [1, 1, 1]} : vector<2x64x4xf32> to vector<2x56x4xf32>
    %10 = tpu.concatenate %1, %2, %3, %4, %5, %6, %7, %8, %9 in 2 : vector<2x56x4xf32>, vector<2x56x4xf32>, vector<2x56x4xf32>, vector<2x56x4xf32>, vector<2x56x4xf32>, vector<2x56x4xf32>, vector<2x56x4xf32>, vector<2x56x4xf32>, vector<2x56x4xf32> -> vector<2x56x36xf32>
    %11 = vector.shape_cast %10 : vector<2x56x36xf32> to vector<112x36xf32>
    %c0_2 = arith.constant 0 : index
    %c0_3 = arith.constant 0 : index
    %12 = vector.load %arg2[%c0_2, %c0_3] : memref<36x8xf32, #tpu.memory_space<vmem>>, vector<36x8xf32>
    %cst = arith.constant dense<0.000000e+00> : vector<112x8xf32>
    %13 = tpu.matmul %11, %12, %cst {dimension_numbers = #tpu.dot_dimension_numbers<[1], [0], [0], [1], [0, 0, 1, 1], [], []>} : vector<112x36xf32>, vector<36x8xf32>, vector<112x8xf32> -> vector<112x8xf32>
    %c0_4 = arith.constant 0 : index
    %c0_5 = arith.constant 0 : index
    %14 = vector.load %arg3[%c0_4, %c0_5] : memref<1x8xf32, #tpu.memory_space<vmem>>, vector<1x8xf32>
    %15 = vector.broadcast %14 : vector<1x8xf32> to vector<112x8xf32>
    %16 = arith.addf %13, %15 : vector<112x8xf32>
    %17 = arith.mulf %16, %16 : vector<112x8xf32>
    %18 = vector.shape_cast %17 : vector<112x8xf32> to vector<2x56x8xf32>
    %c0_6 = arith.constant 0 : index
    %c0_7 = arith.constant 0 : index
    %19 = vector.load %arg4[%c0_6, %c0_7] : memref<6x56xf32, #tpu.memory_space<vmem>>, vector<6x56xf32>
    %20 = vector.shape_cast %19 : vector<6x56xf32> to vector<1x6x56xf32>
    %21 = vector.shape_cast %20 : vector<1x6x56xf32> to vector<1x6x56xf32>
    %22 = vector.broadcast %21 : vector<1x6x56xf32> to vector<2x6x56xf32>
    "tpu.trace_start"() <{level = 10 : i32, message = "bpt,btf->bpf"}> : () -> ()
    %cst_8 = arith.constant dense<0.000000e+00> : vector<2x6x8xf32>
    %23 = tpu.matmul %22, %18, %cst_8 {dimension_numbers = #tpu.dot_dimension_numbers<[2], [1], [1], [2], [0, 0, 0, 1, 1, 2], [0], [0]>} : vector<2x6x56xf32>, vector<2x56x8xf32>, vector<2x6x8xf32> -> vector<2x6x8xf32>
    "tpu.trace_stop"() : () -> ()
    %cst_9 = arith.constant 9.99999997E-7 : f32
    %24 = vector.broadcast %cst_9 : f32 to vector<2x6x8xf32>
    %25 = arith.maximumf %23, %24 : vector<2x6x8xf32>
    %26 = math.log %25 : vector<2x6x8xf32>
    %27 = vector.extract_strided_slice %26 {offsets = [0, 0, 0], sizes = [2, 1, 8], strides = [1, 1, 1]} : vector<2x6x8xf32> to vector<2x1x8xf32>
    %28 = vector.shape_cast %27 : vector<2x1x8xf32> to vector<2x8xf32>
    %29 = vector.extract_strided_slice %26 {offsets = [0, 1, 0], sizes = [2, 1, 8], strides = [1, 1, 1]} : vector<2x6x8xf32> to vector<2x1x8xf32>
    %30 = vector.shape_cast %29 : vector<2x1x8xf32> to vector<2x8xf32>
    %31 = vector.extract_strided_slice %26 {offsets = [0, 2, 0], sizes = [2, 1, 8], strides = [1, 1, 1]} : vector<2x6x8xf32> to vector<2x1x8xf32>
    %32 = vector.shape_cast %31 : vector<2x1x8xf32> to vector<2x8xf32>
    %33 = vector.extract_strided_slice %26 {offsets = [0, 3, 0], sizes = [2, 1, 8], strides = [1, 1, 1]} : vector<2x6x8xf32> to vector<2x1x8xf32>
    %34 = vector.shape_cast %33 : vector<2x1x8xf32> to vector<2x8xf32>
    %35 = vector.extract_strided_slice %26 {offsets = [0, 4, 0], sizes = [2, 1, 8], strides = [1, 1, 1]} : vector<2x6x8xf32> to vector<2x1x8xf32>
    %36 = vector.shape_cast %35 : vector<2x1x8xf32> to vector<2x8xf32>
    %37 = vector.extract_strided_slice %26 {offsets = [0, 5, 0], sizes = [2, 1, 8], strides = [1, 1, 1]} : vector<2x6x8xf32> to vector<2x1x8xf32>
    %38 = vector.shape_cast %37 : vector<2x1x8xf32> to vector<2x8xf32>
    %39 = tpu.concatenate %28, %30, %32, %34, %36, %38 in 1 : vector<2x8xf32>, vector<2x8xf32>, vector<2x8xf32>, vector<2x8xf32>, vector<2x8xf32>, vector<2x8xf32> -> vector<2x48xf32>
    %c0_10 = arith.constant 0 : index
    %c0_11 = arith.constant 0 : index
    %40 = vector.load %arg5[%c0_10, %c0_11] : memref<48x4xf32, #tpu.memory_space<vmem>>, vector<48x4xf32>
    %cst_12 = arith.constant dense<0.000000e+00> : vector<2x4xf32>
    %41 = tpu.matmul %39, %40, %cst_12 {dimension_numbers = #tpu.dot_dimension_numbers<[1], [0], [0], [1], [0, 0, 1, 1], [], []>} : vector<2x48xf32>, vector<48x4xf32>, vector<2x4xf32> -> vector<2x4xf32>
    %c0_13 = arith.constant 0 : index
    %c0_14 = arith.constant 0 : index
    %42 = vector.load %arg6[%c0_13, %c0_14] : memref<1x4xf32, #tpu.memory_space<vmem>>, vector<1x4xf32>
    %43 = vector.broadcast %42 : vector<1x4xf32> to vector<2x4xf32>
    %44 = arith.addf %41, %43 : vector<2x4xf32>
    %cst_15 = arith.constant dense<0xFF800000> : vector<2xf32>
    %45 = vector.multi_reduction <maximumf>, %44, %cst_15 [1] : vector<2x4xf32> to vector<2xf32>
    %46 = vector.shape_cast %45 : vector<2xf32> to vector<2x1xf32>
    %47 = vector.broadcast %46 : vector<2x1xf32> to vector<2x4xf32>
    %48 = arith.subf %44, %47 : vector<2x4xf32>
    %49 = math.exp %48 : vector<2x4xf32>
    %cst_16 = arith.constant dense<0.000000e+00> : vector<2xf32>
    %50 = vector.multi_reduction <add>, %49, %cst_16 [1] : vector<2x4xf32> to vector<2xf32>
    %51 = vector.shape_cast %50 : vector<2xf32> to vector<2x1xf32>
    %52 = math.log %51 : vector<2x1xf32>
    %53 = vector.broadcast %52 : vector<2x1xf32> to vector<2x4xf32>
    %54 = arith.subf %48, %53 : vector<2x4xf32>
    %c0_17 = arith.constant 0 : index
    %c0_18 = arith.constant 0 : index
    %55 = vector.load %arg7[%c0_17, %c0_18] : memref<2x4xf32, #tpu.memory_space<vmem>>, vector<2x4xf32>
    tpu.vector_store %arg7[%c0_17, %c0_18], %54 {strides = array<i32>} : memref<2x4xf32, #tpu.memory_space<vmem>>, vector<2x4xf32>,
    return
  }
  func.func @transform_0(%arg0: i32) -> (i32, i32, i32) {
    %c0_i32 = arith.constant 0 : i32
    %c0_i32_0 = arith.constant 0 : i32
    %c0_i32_1 = arith.constant 0 : i32
    return %arg0, %c0_i32, %c0_i32_0 : i32, i32, i32
  }
  func.func @transform_1(%arg0: i32) -> (i32, i32) {
    %c0_i32 = arith.constant 0 : i32
    %c0_i32_0 = arith.constant 0 : i32
    %c0_i32_1 = arith.constant 0 : i32
    return %c0_i32, %c0_i32_0 : i32, i32
  }
  func.func @transform_2(%arg0: i32) -> (i32, i32) {
    %c0_i32 = arith.constant 0 : i32
    %c0_i32_0 = arith.constant 0 : i32
    %c0_i32_1 = arith.constant 0 : i32
    return %c0_i32, %c0_i32_0 : i32, i32
  }
  func.func @transform_3(%arg0: i32) -> (i32, i32) {
    %c0_i32 = arith.constant 0 : i32
    %c0_i32_0 = arith.constant 0 : i32
    %c0_i32_1 = arith.constant 0 : i32
    return %c0_i32, %c0_i32_0 : i32, i32
  }
  func.func @transform_4(%arg0: i32) -> (i32, i32) {
    %c0_i32 = arith.constant 0 : i32
    %c0_i32_0 = arith.constant 0 : i32
    %c0_i32_1 = arith.constant 0 : i32
    return %c0_i32, %c0_i32_0 : i32, i32
  }
  func.func @transform_5(%arg0: i32) -> (i32, i32) {
    %c0_i32 = arith.constant 0 : i32
    %c0_i32_0 = arith.constant 0 : i32
    %c0_i32_1 = arith.constant 0 : i32
    return %c0_i32, %c0_i32_0 : i32, i32
  }
  func.func @transform_6(%arg0: i32) -> (i32, i32) {
    %c0_i32 = arith.constant 0 : i32
    %c0_i32_0 = arith.constant 0 : i32
    return %arg0, %c0_i32 : i32, i32
  }
}

</mosaic_0001>

<bundles_post_ra>
// kernel: tpu_custom_call.1
= control target key start
LH: loop header
LB: loop body
LE: loop exit
PB: predicated region body
PF: predicated region fallthrough
CT: control target
= control target key end

     0   :  { %vm129_vm0 = vcmask 1045504   ;;  %vm56_vm1 = vcmask 1046528   ;;  %s1465_s27 = smov 8   ;;  %s1466_s28 = smov 4   ;;  %vm202_vm2 = vcmask 1044480   ;;  %s2293_s0 = inlined_call_operand.vmem [shape: f32[2,64,4], index: 0, kind: input, shape index: {}]   ;;  %s2294_s1 = inlined_call_operand.vmem [shape: f32[36,8], index: 1, kind: input, shape index: {}]   ;;  %s2295_s2 = inlined_call_operand.vmem [shape: f32[1,8], index: 2, kind: input, shape index: {}]   ;;  %s2296_s3 = inlined_call_operand.vmem [shape: f32[6,56], index: 3, kind: input, shape index: {}]   ;;  %s2297_s4 = inlined_call_operand.vmem [shape: f32[48,4], index: 4, kind: input, shape index: {}]   ;;  %s2298_s5 = inlined_call_operand.vmem [shape: f32[1,4], index: 5, kind: input, shape index: {}]   ;;  %s2299_s6 = inlined_call_operand.hbm [shape: f32[2,4], index: 6, kind: output, shape index: {}]  }
   0x1   :  { %v1516_v0 = vld [vmem:[%s2293_s0] sm:$0xff]  ;;  %v1521_v1 = vld [vmem:[%s2293_s0 + $0x8] sm:$0xff]  ;;  %v1530_v6 = vld [vmem:[%s2293_s0 + $0x10] sm:$0xff] }
   0x2   :  { %v130_v2 = vrot.slane %v1516_v0, 2  ;;  %v131_v3 = vrot.slane %v1521_v1, 2  ;;  %v57_v4 = vrot.slane %v1516_v0, 1  ;;  %v58_v5 = vrot.slane %v1521_v1, 1  ;;  %v1546_v16 = vld [vmem:[%s2293_s0 + $0x18] sm:$0xff] }
   0x3   :  { %v133_v7 = vrot.slane %v1530_v6, 2  ;;  %v60_v8 = vrot.slane %v1530_v6, 1  ;;  %v204_v11 = vrot.slane %v1521_v1, 3  ;;  %v206_v14 = vrot.slane %v1530_v6, 3 }
   0x4   :  { %v132_v9 = vsel %vm129_vm0, %v130_v2, %v131_v3  ;;  %v59_v10 = vsel %vm56_vm1, %v57_v4, %v58_v5  ;;  %v203_v15 = vrot.slane %v1516_v0, 3 }
   0x5   :  { %160 = vrot.lane.b32.xlu1 %v132_v9, %s1465_s27  ;;  %87 = vrot.lane.b32.xlu0 %v59_v10, %s1466_s28  ;;  %v134_v12 = vsel %vm129_vm0, %v131_v3, %v133_v7  ;;  %v61_v13 = vsel %vm56_vm1, %v58_v5, %v60_v8 }
   0x6   :  { %11 = vsyncpa [#allocation3], 0  ;;  %v62_v17 = vrot.slane %v1546_v16, 1  ;;  %v207_v18 = vsel %vm202_vm2, %v204_v11, %v206_v14  ;;  %v205_v19 = vsel %vm202_vm2, %v203_v15, %v204_v11  ;;  %v276_v20 = vrot.slane %v1516_v0, 4  ;;  %s1467_s7 = smov 12   ;;  %v1565_v27 = vld [vmem:[%s2293_s0 + $0x20] sm:$0xff] }
   0x7   :  { %v277_v21 = vrot.slane %v1521_v1, 4  ;;  %vm275_vm3 = vcmask 1043456   ;;  %v349_v24 = vrot.slane %v1516_v0, 5  ;;  %v350_v25 = vrot.slane %v1521_v1, 5  ;;  %s1468_s10 = smov 16   ;;  %s1469_s11 = smov 20  }
   0x8   :  { %v63_v22 = vsel %vm56_vm1, %v60_v8, %v62_v17  ;;  %v279_v26 = vrot.slane %v1530_v6, 4  ;;  %vm348_vm4 = vcmask 1042432   ;;  %v135_v30 = vrot.slane %v1546_v16, 2  ;;  %s1470_s12 = smov 24   ;;  %s1471_s13 = smov 28   ;;  %v1607_v53 = vld [vmem:[%s2293_s0 + $0x28] sm:$0xff] }
   0x9   :  { %162 = vrot.lane.b32.xlu1 %v134_v12, %s1465_s27  ;;  %89 = vrot.lane.b32.xlu0 %v61_v13, %s1466_s28  ;;  %v278_v23 = vsel %vm275_vm3, %v276_v20, %v277_v21  ;;  %v351_v28 = vsel %vm348_vm4, %v349_v24, %v350_v25  ;;  %v64_v31 = vrot.slane %v1565_v27, 1  ;;  %v422_v32 = vrot.slane %v1516_v0, 6  ;;  %v729_v54 = vld [vmem:[%s2294_s1] sm:$0xff]  ;;  %v730_v55 = vld [vmem:[%s2294_s1 + $0x8] sm:$0xff]  ;;  %s1472_s24 = smov 32  }
   0xa   :  { %v280_v29 = vsel %vm275_vm3, %v277_v21, %v279_v26  ;;  %v136_v33 = vsel %vm129_vm0, %v133_v7, %v135_v30  ;;  %v423_v35 = vrot.slane %v1521_v1, 6  ;;  %v352_v36 = vrot.slane %v1530_v6, 5  ;;  %v731_v56 = vld [vmem:[%s2294_s1 + $0x10] sm:$0xff]  ;;  %v732_v57 = vld [vmem:[%s2294_s1 + $0x18] sm:$0xff]  ;;  %v733_v5 = vld [vmem:[%s2294_s1 + $0x20] sm:$0xf] }
   0xb   :  { %v65_v34 = vsel %vm56_vm1, %v62_v17, %v64_v31  ;;  %vm421_vm5 = vcmask 1041408   ;;  %v208_v39 = vrot.slane %v1546_v16, 3  ;;  %v137_v40 = vrot.slane %v1565_v27, 2  ;;  %v1635_v4 = vld [vmem:[%s2293_s0 + $0x30] sm:$0xff] }
   0xc   :  { %v424_v37 = vsel %vm421_vm5, %v422_v32, %v423_v35  ;;  %v353_v38 = vsel %vm348_vm4, %v350_v25, %v352_v36  ;;  %v495_v41 = vrot.slane %v1516_v0, 7  ;;  %v496_v44 = vrot.slane %v1521_v1, 7 }
   0xd   :  { %235 = vrot.lane.b32.xlu1 %v207_v18, %s1467_s7  ;;  %233 = vrot.lane.b32.xlu0 %v205_v19, %s1467_s7  ;;  %v209_v42 = vsel %vm202_vm2, %v206_v14, %v208_v39  ;;  %v138_v43 = vsel %vm129_vm0, %v135_v30, %v137_v40  ;;  %v425_v45 = vrot.slane %v1530_v6, 6  ;;  %vm494_vm6 = vcmask 1040384  }
   0xe   :  { %v497_v46 = vsel %vm494_vm6, %v495_v41, %v496_v44  ;;  %v281_v48 = vrot.slane %v1546_v16, 4  ;;  %v210_v49 = vrot.slane %v1565_v27, 3  ;;  %v498_v52 = vrot.slane %v1530_v6, 7 }
   0xf   :  { %v426_v47 = vsel %vm421_vm5, %v423_v35, %v425_v45  ;;  %v283_v59 = vrot.slane %v1565_v27, 4  ;;  %v66_v60 = vrot.slane %v1607_v53, 1  ;;  %v1385_v61 = vpack.c.bf16 %v730_v55, %v729_v54 }
  0x10   :  { %v282_v50 = vsel %vm275_vm3, %v279_v26, %v281_v48  ;;  %v211_v51 = vsel %vm202_vm2, %v208_v39, %v210_v49  ;;  %v499_v58 = vsel %vm494_vm6, %v496_v44, %v498_v52  ;;  %v1389_v62 = vpack.c.bf16 %v732_v57, %v731_v56  ;;  %v1701_v39 = vld [vmem:[%s2293_s0 + $0x48] sm:$0xff] }
  0x11   :  { %91 = vrot.lane.b32.xlu1 %v63_v22, %s1466_s28  ;;  %306 = vrot.lane.b32.xlu0 %v278_v23, %s1468_s10  ;;  %v284_v63 = vsel %vm275_vm3, %v281_v48, %v283_v59  ;;  %v67_v2 = vsel %vm56_vm1, %v64_v31, %v66_v60  ;;  %v354_v3 = vrot.slane %v1546_v16, 5  ;;  %v139_v8 = vrot.slane %v1607_v53, 2  ;;  %v1680_v31 = vld [vmem:[%s2293_s0 + $0x38] sm:$0xff] }
  0x12   :  { %1386 = vmatprep.subr.bf16.mxu0 %v1385_v61  ;;  %v68_v9 = vrot.slane %v1635_v4, 1  ;;  %v427_v12 = vrot.slane %v1546_v16, 6  ;;  %v356_v13 = vrot.slane %v1565_v27, 5  ;;  %v212_v17 = vrot.slane %v1607_v53, 3 }
  0x13   :  { %1388 = vmatpush3.bf16.msra.mxu0 %v1385_v61  ;;  %v355_v7 = vsel %vm348_vm4, %v352_v36, %v354_v3  ;;  %v140_v10 = vsel %vm129_vm0, %v137_v40, %v139_v8  ;;  %v141_v18 = vrot.slane %v1635_v4, 2  ;;  %v500_v21 = vrot.slane %v1546_v16, 7 }
  0x14   :  { %1390 = vmatprep.subr.bf16.mxu0 %v1389_v62  ;;  %v69_v11 = vsel %vm56_vm1, %v66_v60, %v68_v9  ;;  %v428_v14 = vsel %vm421_vm5, %v425_v45, %v427_v12  ;;  %v357_v15 = vsel %vm348_vm4, %v354_v3, %v356_v13  ;;  %v213_v19 = vsel %vm202_vm2, %v210_v49, %v212_v17 }
  0x15   :  { %379 = vrot.lane.b32.xlu1 %v351_v28, %s1469_s11  ;;  %308 = vrot.lane.b32.xlu0 %v280_v29, %s1468_s10  ;;  %v142_v20 = vsel %vm129_vm0, %v139_v8, %v141_v18  ;;  %v429_v22 = vrot.slane %v1565_v27, 6  ;;  %v501_v23 = vsel %vm494_vm6, %v498_v52, %v500_v21  ;;  %v285_v25 = vrot.slane %v1607_v53, 4 }
  0x16   :  { %v214_v26 = vrot.slane %v1635_v4, 3  ;;  %v502_v30 = vrot.slane %v1565_v27, 7  ;;  %v143_v41 = vrot.slane %v1680_v31, 2  ;;  %v216_v48 = vrot.slane %v1680_v31, 3 }
  0x17   :  { %1392 = vmatpush3.bf16.msra.mxu0 %v1389_v62  ;;  %v430_v24 = vsel %vm421_vm5, %v427_v12, %v429_v22  ;;  %v286_v28 = vsel %vm275_vm3, %v283_v59, %v285_v25  ;;  %v146_v52 = vrot.slane %v1701_v39, 2  ;;  %v504_v56 = vrot.slane %v1607_v53, 7 }
  0x18   :  { %1313 = vmatprep.subr.msk.mxu0 %vm275_vm3, %v733_v5  ;;  %v215_v29 = vsel %vm202_vm2, %v212_v17, %v214_v26  ;;  %v503_v32 = vsel %vm494_vm6, %v500_v21, %v502_v30  ;;  %v144_v44 = vsel %vm129_vm0, %v141_v18, %v143_v41  ;;  %v217_v54 = vsel %vm202_vm2, %v214_v26, %v216_v48 }
  0x19   :  { %164 = vrot.lane.b32.xlu1 %v136_v33, %s1465_s27  ;;  %93 = vrot.lane.b32.xlu0 %v65_v34, %s1466_s28  ;;  %v287_v33 = vrot.slane %v1635_v4, 4  ;;  %v70_v34 = vrot.slane %v1680_v31, 1  ;;  %v433_v57 = vrot.slane %v1635_v4, 6  ;;  %v505_v59 = vsel %vm494_vm6, %v502_v30, %v504_v56 }
  0x1a   :  { %v219_v62 = vrot.slane %v1701_v39, 3  ;;  %v506_v3 = vrot.slane %v1635_v4, 7  ;;  %vm609_vm7 = vcmask 31744   ;;  %vm624_vm8 = vcmask 64512  }
  0x1b   :  { %1314 = vmatpush3.msk.msra.mxu0 %vm275_vm3, %v733_v5  ;;  %v288_v35 = vsel %vm275_vm3, %v285_v25, %v287_v33  ;;  %v71_v36 = vsel %vm56_vm1, %v68_v9, %v70_v34  ;;  %v1744_v5 = vld [vmem:[%s2293_s0 + $0x50] sm:$0xff]  ;;  %v292_v9 = vrot.slane %v1701_v39, 4  ;;  %v508_v34 = vrot.slane %v1680_v31, 7 }
  0x1c   :  { %v148_v17 = vrot.slane %v1744_v5, 2  ;;  %vm639_vm9 = vcmask 97280   ;;  %vm654_vm10 = vcmask 130048   ;;  %vm669_vm11 = vcmask 162816  }
  0x1d   :  { %452 = vrot.lane.b32.xlu1 %v424_v37, %s1470_s12  ;;  %381 = vrot.lane.b32.xlu0 %v353_v38, %s1469_s11  ;;  %v358_v37 = vrot.slane %v1607_v53, 5  ;;  %v1696_v38 = vld [vmem:[%s2293_s0 + $0x40] sm:$0xff]  ;;  %vm684_vm12 = vcmask 195584   ;;  %vm699_vm13 = vcmask 228352   ;;  %vm714_vm14 = vcmask 261120  }
  0x1e   :  { %v218_v61 = vrot.slane %v1696_v38, 3  ;;  %v291_v8 = vrot.slane %v1696_v38, 4  ;;  %vm741_vm15 = vcmask 293888  }
  0x1f   :  { %v359_v40 = vsel %vm348_vm4, %v356_v13, %v358_v37  ;;  %v362_v13 = vrot.slane %v1680_v31, 5 }
  0x21   :  { %237 = vrot.lane.b32.xlu1 %v209_v42, %s1467_s7  ;;  %166 = vrot.lane.b32.xlu0 %v138_v43, %s1465_s27  ;;  %v72_v42 = vrot.slane %v1696_v38, 1  ;;  %v73_v43 = vrot.slane %v1701_v39, 1 }
  0x23   :  { %v74_v45 = vsel %vm56_vm1, %v72_v42, %v73_v43 }
  0x25   :  { %525 = vrot.lane.b32.xlu1 %v497_v46, %s1471_s13  ;;  %454 = vrot.lane.b32.xlu0 %v426_v47, %s1470_s12  ;;  %v431_v46 = vrot.slane %v1607_v53, 6  ;;  %v360_v47 = vrot.slane %v1635_v4, 5 }
  0x27   :  { %v432_v49 = vsel %vm421_vm5, %v429_v22, %v431_v46  ;;  %v434_v60 = vsel %vm421_vm5, %v431_v46, %v433_v57  ;;  %v364_v22 = vrot.slane %v1696_v38, 5 }
  0x29   :  { %310 = vrot.lane.b32.xlu1 %v282_v50, %s1468_s10  ;;  %239 = vrot.lane.b32.xlu0 %v211_v51, %s1467_s7  ;;  %v361_v50 = vsel %vm348_vm4, %v358_v37, %v360_v47  ;;  %v145_v51 = vrot.slane %v1696_v38, 2  ;;  %v437_v37 = vrot.slane %v1696_v38, 6 }
  0x2b   :  { %v147_v55 = vsel %vm129_vm0, %v145_v51, %v146_v52  ;;  %v510_v51 = vrot.slane %v1696_v38, 7 }
  0x2d   :  { %567 = vrot.lane.b32.xlu1 %v1521_v1, %s1472_s24  ;;  %527 = vrot.lane.b32.xlu0 %v499_v58, %s1471_s13  ;;  %v289_v58 = vrot.slane %v1680_v31, 4 }
  0x31   :  { %312 = vrot.lane.b32.xlu1 %v284_v63, %s1468_s10  ;;  %95 = vrot.lane.b32.xlu0 %v67_v2, %s1466_s28  ;;  %v290_v63 = vsel %vm275_vm3, %v287_v33, %v289_v58  ;;  %v220_v2 = vsel %vm202_vm2, %v218_v61, %v219_v62 }
  0x35   :  { %569 = vrot.lane.b32.xlu1 %v1530_v6, %s1472_s24  ;;  %383 = vrot.lane.b32.xlu0 %v355_v7, %s1469_s11  ;;  %v507_v7 = vsel %vm494_vm6, %v504_v56, %v506_v3  ;;  %v1820_v56 = vld [vmem:[%s2293_s0 + $0x60] sm:$0xff] }
  0x39   :  { %168 = vrot.lane.b32.xlu1 %v140_v10, %s1465_s27  ;;  %97 = vrot.lane.b32.xlu0 %v69_v11, %s1466_s28  ;;  %v75_v10 = vrot.slane %v1744_v5, 1  ;;  %v293_v11 = vsel %vm275_vm3, %v291_v8, %v292_v9  ;;  %v1846_v8 = vld [vmem:[%s2293_s0 + $0x68] sm:$0xff] }
  0x3b   :  { %v76_v12 = vsel %vm56_vm1, %v73_v43, %v75_v10  ;;  %v509_v43 = vsel %vm494_vm6, %v506_v3, %v508_v34 }
  0x3d   :  { %456 = vrot.lane.b32.xlu1 %v428_v14, %s1470_s12  ;;  %385 = vrot.lane.b32.xlu0 %v357_v15, %s1469_s11  ;;  %v1761_v14 = vld [vmem:[%s2293_s0 + $0x58] sm:$0xff]  ;;  %v363_v15 = vsel %vm348_vm4, %v360_v47, %v362_v13 }
  0x3e   :  { %v77_v18 = vrot.slane %v1761_v14, 1  ;;  %v150_v30 = vrot.slane %v1761_v14, 2  ;;  %v223_v46 = vrot.slane %v1761_v14, 3  ;;  %v296_v58 = vrot.slane %v1761_v14, 4 }
  0x40   :  { %v78_v21 = vsel %vm56_vm1, %v75_v10, %v77_v18  ;;  %v81_v10 = vrot.slane %v1846_v8, 1 }
  0x41   :  { %241 = vrot.lane.b32.xlu1 %v213_v19, %s1467_s7  ;;  %170 = vrot.lane.b32.xlu0 %v142_v20, %s1465_s27  ;;  %v435_v19 = vrot.slane %v1680_v31, 6  ;;  %v149_v20 = vsel %vm129_vm0, %v146_v52, %v148_v17  ;;  %v511_v52 = vrot.slane %v1701_v39, 7 }
  0x43   :  { %v436_v26 = vsel %vm421_vm5, %v433_v57, %v435_v19  ;;  %v512_v57 = vsel %vm494_vm6, %v510_v51, %v511_v52  ;;  %v227_v51 = vrot.slane %v1846_v8, 3 }
  0x45   :  { %529 = vrot.lane.b32.xlu1 %v501_v23, %s1471_s13  ;;  %458 = vrot.lane.b32.xlu0 %v430_v24, %s1470_s12  ;;  %v365_v23 = vrot.slane %v1701_v39, 5 }
  0x49   :  { %314 = vrot.lane.b32.xlu1 %v286_v28, %s1468_s10  ;;  %243 = vrot.lane.b32.xlu0 %v215_v29, %s1467_s7  ;;  %v366_v28 = vsel %vm348_vm4, %v364_v22, %v365_v23  ;;  %v221_v29 = vrot.slane %v1744_v5, 3  ;;  %v225_v22 = vrot.slane %v1820_v56, 3 }
  0x4d   :  { %571 = vrot.lane.b32.xlu1 %v1546_v16, %s1472_s24  ;;  %531 = vrot.lane.b32.xlu0 %v503_v32, %s1471_s13 }
  0x51   :  { %316 = vrot.lane.b32.xlu1 %v288_v35, %s1468_s10  ;;  %99 = vrot.lane.b32.xlu0 %v71_v36, %s1466_s28  ;;  %v222_v35 = vsel %vm202_vm2, %v219_v62, %v221_v29  ;;  %v151_v36 = vsel %vm129_vm0, %v148_v17, %v150_v30  ;;  %v440_v17 = vrot.slane %v1744_v5, 6 }
  0x55   :  { %573 = vrot.lane.b32.xlu1 %v1565_v27, %s1472_s24  ;;  %387 = vrot.lane.b32.xlu0 %v359_v40, %s1469_s11  ;;  %v438_v40 = vrot.slane %v1701_v39, 6 }
  0x59   :  { %172 = vrot.lane.b32.xlu1 %v144_v44, %s1465_s27  ;;  %101 = vrot.lane.b32.xlu0 %v74_v45, %s1466_s28  ;;  %v439_v44 = vsel %vm421_vm5, %v437_v37, %v438_v40  ;;  %v294_v45 = vrot.slane %v1744_v5, 4 }
  0x5b   :  { %v297_v62 = vsel %vm275_vm3, %v294_v45, %v296_v58 }
  0x5d   :  { %460 = vrot.lane.b32.xlu1 %v432_v49, %s1470_s12  ;;  %389 = vrot.lane.b32.xlu0 %v361_v50, %s1469_s11  ;;  %v295_v49 = vsel %vm275_vm3, %v292_v9, %v294_v45  ;;  %v224_v50 = vsel %vm202_vm2, %v221_v29, %v223_v46  ;;  %v152_v9 = vrot.slane %v1820_v56, 2 }
  0x5f   :  { %v153_v13 = vsel %vm129_vm0, %v150_v30, %v152_v9 }
  0x61   :  { %245 = vrot.lane.b32.xlu1 %v217_v54, %s1467_s7  ;;  %174 = vrot.lane.b32.xlu0 %v147_v55, %s1465_s27 }
  0x65   :  { %533 = vrot.lane.b32.xlu1 %v505_v59, %s1471_s13  ;;  %462 = vrot.lane.b32.xlu0 %v434_v60, %s1470_s12  ;;  %v79_v59 = vrot.slane %v1820_v56, 1 }
  0x69   :  { %318 = vrot.lane.b32.xlu1 %v290_v63, %s1468_s10  ;;  %247 = vrot.lane.b32.xlu0 %v220_v2, %s1467_s7  ;;  %v80_v63 = vsel %vm56_vm1, %v77_v18, %v79_v59  ;;  %v367_v2 = vrot.slane %v1744_v5, 5  ;;  %v369_v18 = vrot.slane %v1761_v14, 5 }
  0x6d   :  { %575 = vrot.lane.b32.xlu1 %v1607_v53, %s1472_s24  ;;  %535 = vrot.lane.b32.xlu0 %v507_v7, %s1471_s13 }
  0x71   :  { %320 = vrot.lane.b32.xlu1 %v293_v11, %s1468_s10  ;;  %103 = vrot.lane.b32.xlu0 %v76_v12, %s1466_s28 }
  0x75   :  { %577 = vrot.lane.b32.xlu1 %v1635_v4, %s1472_s24  ;;  %391 = vrot.lane.b32.xlu0 %v363_v15, %s1469_s11  ;;  %v82_v15 = vsel %vm56_vm1, %v79_v59, %v81_v10 }
  0x77   :  { %v1776_v24 = vpop.permute.xlu1 %160  ;;  %v1778_v25 = vpop.permute.xlu0 %87 }
  0x78   :  { %v610_v19 = vsel %vm609_vm7, %v1516_v0, %v1778_v25  ;;  %v370_v0 = vsel %vm348_vm4, %v367_v2, %v369_v18  ;;  %v154_v25 = vrot.slane %v1846_v8, 2 }
  0x79   :  { %176 = vrot.lane.b32.xlu1 %v149_v20, %s1465_s27  ;;  %105 = vrot.lane.b32.xlu0 %v78_v21, %s1466_s28 }
  0x7a   :  { %v155_v37 = vsel %vm129_vm0, %v152_v9, %v154_v25 }
  0x7b   :  { %v1786_v32 = vpop.permute.xlu1 %162  ;;  %v1788_v33 = vpop.permute.xlu0 %89 }
  0x7d   :  { %464 = vrot.lane.b32.xlu1 %v436_v26, %s1470_s12  ;;  %393 = vrot.lane.b32.xlu0 %v366_v28, %s1469_s11  ;;  %v441_v26 = vsel %vm421_vm5, %v438_v40, %v440_v17  ;;  %v513_v40 = vrot.slane %v1744_v5, 7 }
  0x7f   :  { %v1797_v41 = vpop.permute.xlu1 %235  ;;  %v234_v42 = vpop.permute.xlu0 %233 }
  0x81   :  { %249 = vrot.lane.b32.xlu1 %v222_v35, %s1467_s7  ;;  %178 = vrot.lane.b32.xlu0 %v151_v36, %s1465_s27  ;;  %v226_v35 = vsel %vm202_vm2, %v223_v46, %v225_v22 }
  0x83   :  { %v1805_v47 = vpop.permute.xlu1 %91  ;;  %v307_v48 = vpop.permute.xlu0 %306 }
  0x85   :  { %537 = vrot.lane.b32.xlu1 %v509_v43, %s1471_s13  ;;  %466 = vrot.lane.b32.xlu0 %v439_v44, %s1470_s12  ;;  %v611_v43 = vsel %vm609_vm7, %v1521_v1, %v1788_v33  ;;  %v514_v1 = vsel %vm494_vm6, %v511_v52, %v513_v40 }
  0x87   :  { %v380_v54 = vpop.permute.xlu1 %379  ;;  %v1815_v55 = vpop.permute.xlu0 %308 }
  0x89   :  { %322 = vrot.lane.b32.xlu1 %v295_v49, %s1468_s10  ;;  %251 = vrot.lane.b32.xlu0 %v224_v50, %s1467_s7  ;;  %v298_v49 = vrot.slane %v1820_v56, 4  ;;  %v626_v50 = vsel %vm624_vm8, %v611_v43, %v1786_v32 }
  0x8b   :  { %v1829_v60 = vpop.permute.xlu1 %164  ;;  %v1831_v61 = vpop.permute.xlu0 %93 }
  0x8d   :  { %579 = vrot.lane.b32.xlu1 %v1680_v31, %s1472_s24  ;;  %539 = vrot.lane.b32.xlu0 %v512_v57, %s1471_s13  ;;  %v368_v31 = vsel %vm348_vm4, %v365_v23, %v367_v2  ;;  %v625_v23 = vsel %vm624_vm8, %v610_v19, %v1776_v24  ;;  %v515_v2 = vrot.slane %v1761_v14, 7 }
  0x8e   :  { %v640_v28 = vsel %vm639_vm9, %v625_v23, %v234_v42  ;;  %v442_v42 = vrot.slane %v1761_v14, 6 }
  0x8f   :  { %v453_v3 = vpop.permute.xlu1 %452  ;;  %v1841_v7 = vpop.permute.xlu0 %381  ;;  %v655_v34 = vsel %vm654_vm10, %v640_v28, %v307_v48 }
  0x90   :  { %v670_v24 = vsel %vm669_vm11, %v655_v34, %v380_v54  ;;  %v443_v33 = vsel %vm421_vm5, %v440_v17, %v442_v42  ;;  %v641_v54 = vsel %vm639_vm9, %v626_v50, %v1797_v41  ;;  %v299_v41 = vsel %vm275_vm3, %v296_v58, %v298_v49 }
  0x91   :  { %324 = vrot.lane.b32.xlu1 %v297_v62, %s1468_s10  ;;  %107 = vrot.lane.b32.xlu0 %v80_v63, %s1466_s28  ;;  %v685_v36 = vsel %vm684_vm12, %v670_v24, %v453_v3  ;;  %v656_v32 = vsel %vm654_vm10, %v641_v54, %v1815_v55  ;;  %v228_v63 = vsel %vm202_vm2, %v225_v22, %v227_v51  ;;  %v371_v22 = vrot.slane %v1820_v56, 5 }
  0x92   :  { %v671_v62 = vsel %vm669_vm11, %v656_v32, %v1841_v7  ;;  %v516_v58 = vsel %vm494_vm6, %v513_v40, %v515_v2  ;;  %v373_v40 = vrot.slane %v1846_v8, 5 }
  0x93   :  { %v1853_v11 = vpop.permute.xlu1 %237  ;;  %v1855_v12 = vpop.permute.xlu0 %166  ;;  %v372_v28 = vsel %vm348_vm4, %v369_v18, %v371_v22 }
  0x95   :  { %581 = vrot.lane.b32.xlu1 %v1701_v39, %s1472_s24  ;;  %395 = vrot.lane.b32.xlu0 %v368_v31, %s1469_s11  ;;  %v1939_v31 = vld [vmem:[%s2293_s0 + $0x70] sm:$0xff] }
  0x96   :  { %v156_v34 = vrot.slane %v1939_v31, 2 }
  0x97   :  { %v526_v20 = vpop.permute.xlu1 %525  ;;  %v455_v21 = vpop.permute.xlu0 %454 }
  0x98   :  { %v700_v44 = vsel %vm699_vm13, %v685_v36, %v526_v20  ;;  %v686_v52 = vsel %vm684_vm12, %v671_v62, %v455_v21  ;;  %v444_v36 = vrot.slane %v1820_v56, 6  ;;  %v446_v62 = vrot.slane %v1846_v8, 6 }
  0x99   :  { %180 = vrot.lane.b32.xlu1 %v153_v13, %s1465_s27  ;;  %109 = vrot.lane.b32.xlu0 %v82_v15, %s1466_s28  ;;  %v300_v13 = vrot.slane %v1846_v8, 4  ;;  %v83_v15 = vrot.slane %v1939_v31, 1 }
  0x9b   :  { %v1880_v29 = vpop.permute.xlu1 %310  ;;  %v1882_v30 = vpop.permute.xlu0 %239  ;;  %v301_v20 = vsel %vm275_vm3, %v298_v49, %v300_v13  ;;  %v84_v21 = vsel %vm56_vm1, %v81_v10, %v83_v15  ;;  %v229_v49 = vrot.slane %v1939_v31, 3 }
  0x9d   :  { %468 = vrot.lane.b32.xlu1 %v441_v26, %s1470_s12  ;;  %397 = vrot.lane.b32.xlu0 %v370_v0, %s1469_s11  ;;  %v1967_v0 = vld [vmem:[%s2293_s0 + $0x78] sm:$0xff] }
  0x9e   :  { %v85_v10 = vrot.slane %v1967_v0, 1  ;;  %v158_v50 = vrot.slane %v1967_v0, 2 }
  0x9f   :  { %v568_v45 = vpop.permute.xlu1 %567  ;;  %v528_v48 = vpop.permute.xlu0 %527 }
  0xa0   :  { %v715_v46 = vsel %vm714_vm14, %v700_v44, %v568_v45  ;;  %v701_v55 = vsel %vm699_vm13, %v686_v52, %v528_v48  ;;  %v86_v18 = vsel %vm56_vm1, %v83_v15, %v85_v10  ;;  %v612_v45 = vsel %vm609_vm7, %v1530_v6, %v1805_v47 }
  0xa1   :  { %253 = vrot.lane.b32.xlu1 %v226_v35, %s1467_s7  ;;  %182 = vrot.lane.b32.xlu0 %v155_v37, %s1465_s27  ;;  %v157_v37 = vsel %vm129_vm0, %v154_v25, %v156_v34  ;;  %v445_v48 = vsel %vm421_vm5, %v442_v42, %v444_v36  ;;  %v627_v25 = vsel %vm624_vm8, %v612_v45, %v1829_v60  ;;  %v517_v60 = vrot.slane %v1820_v56, 7 }
  0xa2   :  { %1315 = vmatprep.mubr.msk.f32.mxu0 %vm741_vm15, %v715_v46  ;;  %v374_v46 = vsel %vm348_vm4, %v371_v22, %v373_v40  ;;  %v642_v6 = vsel %vm639_vm9, %v627_v25, %v1853_v11  ;;  %v230_v11 = vsel %vm202_vm2, %v227_v51, %v229_v49  ;;  %v159_v32 = vsel %vm129_vm0, %v156_v34, %v158_v50 }
  0xa3   :  { %v1917_v57 = vpop.permute.xlu1 %312  ;;  %v1919_v59 = vpop.permute.xlu0 %95  ;;  %v518_v51 = vsel %vm494_vm6, %v515_v2, %v517_v60  ;;  %v519_v22 = vrot.slane %v1846_v8, 7  ;;  %v304_v10 = vrot.slane %v1967_v0, 4  ;;  %vm1474_vm0 = vmmov 0  }
  0xa4   :  { %vm937_vm1 = vcmask 457728  }
  0xa5   :  { %541 = vrot.lane.b32.xlu1 %v514_v1, %s1471_s13  ;;  %470 = vrot.lane.b32.xlu0 %v443_v33, %s1470_s12  ;;  %v657_v33 = vsel %vm654_vm10, %v642_v6, %v1880_v29  ;;  %v520_v34 = vsel %vm494_vm6, %v517_v60, %v519_v22  ;;  %v523_v60 = vrot.slane %v1967_v0, 7 }
  0xa7   :  { %v570_v3 = vpop.permute.xlu1 %569  ;;  %v384_v7 = vpop.permute.xlu0 %383 }
  0xa8   :  { %v716_v9 = vsel %vm714_vm14, %v701_v55, %v570_v3  ;;  %v672_v42 = vsel %vm669_vm11, %v657_v33, %v384_v7  ;;  %v613_v55 = vsel %vm609_vm7, %v1546_v16, %v1831_v61  ;;  %v447_v7 = vsel %vm421_vm5, %v444_v36, %v446_v62 }
  0xa9   :  { %326 = vrot.lane.b32.xlu1 %v299_v41, %s1468_s10  ;;  %255 = vrot.lane.b32.xlu0 %v228_v63, %s1467_s7  ;;  %v628_v3 = vsel %vm624_vm8, %v613_v55, %v1855_v12 }
  0xaa   :  { %1316 = vmatmul.mubr.msk.f32.vlgmr.msra.gmra.mrb[0].mxu0 %vm741_vm15, %v716_v9  ;;  %v302_v9 = vrot.slane %v1939_v31, 4  ;;  %v643_v16 = vsel %vm639_vm9, %v628_v3, %v1882_v30 }
  0xab   :  { %v1950_v17 = vpop.permute.xlu1 %168  ;;  %v1952_v19 = vpop.permute.xlu0 %97  ;;  %v658_v2 = vsel %vm654_vm10, %v643_v16, %v1917_v57 }
  0xad   :  { %583 = vrot.lane.b32.xlu1 %v1744_v5, %s1472_s24  ;;  %543 = vrot.lane.b32.xlu0 %v516_v58, %s1471_s13  ;;  %v231_v58 = vrot.slane %v1967_v0, 3 }
  0xaf   :  { %v457_v23 = vpop.permute.xlu1 %456  ;;  %v386_v26 = vpop.permute.xlu0 %385  ;;  %v232_v30 = vsel %vm202_vm2, %v229_v49, %v231_v58  ;;  %v450_v49 = vrot.slane %v1967_v0, 6  ;;  %vm1090_vm2 = vcmask 1041409  }
  0xb0   :  { %v687_v54 = vsel %vm684_vm12, %v672_v42, %v457_v23  ;;  %v673_v12 = vsel %vm669_vm11, %v658_v2, %v386_v26  ;;  %v521_v42 = vrot.slane %v1939_v31, 7 }
  0xb1   :  { %328 = vrot.lane.b32.xlu1 %v301_v20, %s1468_s10  ;;  %111 = vrot.lane.b32.xlu0 %v84_v21, %s1466_s28  ;;  %v303_v21 = vsel %vm275_vm3, %v300_v13, %v302_v9  ;;  %v375_v13 = vrot.slane %v1939_v31, 5 }
  0xb3   :  { %v1976_v24 = vpop.permute.xlu1 %241  ;;  %v1978_v35 = vpop.permute.xlu0 %170 }
  0xb5   :  { %585 = vrot.lane.b32.xlu1 %v1761_v14, %s1472_s24  ;;  %399 = vrot.lane.b32.xlu0 %v372_v28, %s1469_s11 }
  0xb7   :  { %v530_v43 = vpop.permute.xlu1 %529  ;;  %v459_v44 = vpop.permute.xlu0 %458 }
  0xb8   :  { %v702_v29 = vsel %vm699_vm13, %v687_v54, %v530_v43  ;;  %v688_v20 = vsel %vm684_vm12, %v673_v12, %v459_v44  ;;  %v305_v43 = vsel %vm275_vm3, %v302_v9, %v304_v10  ;;  %v377_v44 = vrot.slane %v1967_v0, 5 }
  0xb9   :  { %184 = vrot.lane.b32.xlu1 %v157_v37, %s1465_s27  ;;  %113 = vrot.lane.b32.xlu0 %v86_v18, %s1466_s28  ;;  %v376_v18 = vsel %vm348_vm4, %v373_v40, %v375_v13  ;;  %vm1126_vm3 = vcmask 326656  }
  0xba   :  { %v378_v25 = vsel %vm348_vm4, %v375_v13, %v377_v44  ;;  %vm1141_vm4 = vcmask 392192  }
  0xbb   :  { %v2004_v47 = vpop.permute.xlu1 %314  ;;  %v2006_v1 = vpop.permute.xlu0 %243 }
  0xbd   :  { %472 = vrot.lane.b32.xlu1 %v445_v48, %s1470_s12  ;;  %401 = vrot.lane.b32.xlu0 %v374_v46, %s1469_s11  ;;  %v448_v46 = vrot.slane %v1939_v31, 6 }
  0xbf   :  { %v572_v52 = vpop.permute.xlu1 %571  ;;  %v532_v41 = vpop.permute.xlu0 %531  ;;  %v451_v40 = vsel %vm421_vm5, %v448_v46, %v450_v49  ;;  %v449_v33 = vsel %vm421_vm5, %v446_v62, %v448_v46  ;;  %v522_v62 = vsel %vm494_vm6, %v519_v22, %v521_v42  ;;  %vm1215_vm5 = vcmask 25600  }
  0xc0   :  { %v717_v63 = vsel %vm714_vm14, %v702_v29, %v572_v52  ;;  %v703_v23 = vsel %vm699_vm13, %v688_v20, %v532_v41  ;;  %v524_v52 = vsel %vm494_vm6, %v521_v42, %v523_v60 }
  0xc1   :  { %257 = vrot.lane.b32.xlu1 %v230_v11, %s1467_s7  ;;  %186 = vrot.lane.b32.xlu0 %v159_v32, %s1465_s27  ;;  %v614_v32 = vsel %vm609_vm7, %v1565_v27, %v1919_v59 }
  0xc2   :  { %1318 = vmatprep.mubr.msk.f32.mxu0 %vm741_vm15, %v717_v63  ;;  %v629_v29 = vsel %vm624_vm8, %v614_v32, %v1950_v17 }
  0xc3   :  { %v2038_v61 = vpop.permute.xlu1 %316  ;;  %v2040_v15 = vpop.permute.xlu0 %99  ;;  %v644_v41 = vsel %vm639_vm9, %v629_v29, %v1976_v24  ;;  %v615_v24 = vsel %vm609_vm7, %v1607_v53, %v1952_v19 }
  0xc5   :  { %545 = vrot.lane.b32.xlu1 %v518_v51, %s1471_s13  ;;  %474 = vrot.lane.b32.xlu0 %v447_v7, %s1470_s12  ;;  %v659_v51 = vsel %vm654_vm10, %v644_v41, %v2004_v47  ;;  %v630_v47 = vsel %vm624_vm8, %v615_v24, %v1978_v35 }
  0xc6   :  { %v645_v58 = vsel %vm639_vm9, %v630_v47, %v2006_v1 }
  0xc7   :  { %v574_v28 = vpop.permute.xlu1 %573  ;;  %v388_v57 = vpop.permute.xlu0 %387  ;;  %v660_v12 = vsel %vm654_vm10, %v645_v58, %v2038_v61 }
  0xc8   :  { %v718_v26 = vsel %vm714_vm14, %v703_v23, %v574_v28  ;;  %v674_v27 = vsel %vm669_vm11, %v659_v51, %v388_v57 }
  0xc9   :  { %330 = vrot.lane.b32.xlu1 %v303_v21, %s1468_s10  ;;  %259 = vrot.lane.b32.xlu0 %v232_v30, %s1467_s7 }
  0xca   :  { %1319 = vmatmul.mubr.msk.f32.gmra.mrb[2].mxu0 %vm741_vm15, %v718_v26 }
  0xcb   :  { %v2061_v36 = vpop.permute.xlu1 %172  ;;  %v2063_v37 = vpop.permute.xlu0 %101 }
  0xcd   :  { %587 = vrot.lane.b32.xlu1 %v1820_v56, %s1472_s24  ;;  %547 = vrot.lane.b32.xlu0 %v520_v34, %s1471_s13  ;;  %v616_v34 = vsel %vm609_vm7, %v1635_v4, %v2040_v15  ;;  %v617_v4 = vsel %vm609_vm7, %v1696_v38, %v2063_v37 }
  0xce   :  { %v631_v13 = vsel %vm624_vm8, %v616_v34, %v2061_v36  ;;  %v1473_v36 = vmov 0.0|0.0  }
  0xcf   :  { %v461_v45 = vpop.permute.xlu1 %460  ;;  %v390_v48 = vpop.permute.xlu0 %389  ;;  %1393 = vmatprep.subr.bf16.mxu1 %v1473_v36  ;;  %1411 = vmatprep.subr.bf16.mxu0 %v1473_v36 }
  0xd0   :  { %v689_v59 = vsel %vm684_vm12, %v674_v27, %v461_v45  ;;  %v675_v53 = vsel %vm669_vm11, %v660_v12, %v390_v48 }
  0xd1   :  { %403 = vrot.lane.b32.xlu1 %v376_v18, %s1469_s11  ;;  %332 = vrot.lane.b32.xlu0 %v305_v43, %s1468_s10 }
  0xd3   :  { %v246_v50 = vpop.permute.xlu1 %245  ;;  %v2076_v6 = vpop.permute.xlu0 %174 }
  0xd4   :  { %v646_v10 = vsel %vm639_vm9, %v631_v13, %v246_v50  ;;  %v632_v15 = vsel %vm624_vm8, %v617_v4, %v2076_v6 }
  0xd5   :  { %405 = vrot.lane.b32.xlu1 %v378_v25, %s1469_s11  ;;  %589 = vrot.lane.b32.xlu0 %v1846_v8, %s1472_s24 }
  0xd7   :  { %v534_v54 = vpop.permute.xlu1 %533  ;;  %v463_v11 = vpop.permute.xlu0 %462 }
  0xd8   :  { %v704_v17 = vsel %vm699_vm13, %v689_v59, %v534_v54  ;;  %v690_v19 = vsel %vm684_vm12, %v675_v53, %v463_v11 }
  0xd9   :  { %478 = vrot.lane.b32.xlu1 %v451_v40, %s1470_s12  ;;  %476 = vrot.lane.b32.xlu0 %v449_v33, %s1470_s12 }
  0xdb   :  { %v319_v63 = vpop.permute.xlu1 %318  ;;  %v248_v55 = vpop.permute.xlu0 %247 }
  0xdc   :  { %v661_v44 = vsel %vm654_vm10, %v646_v10, %v319_v63  ;;  %v647_v50 = vsel %vm639_vm9, %v632_v15, %v248_v55 }
  0xdd   :  { %551 = vrot.lane.b32.xlu1 %v524_v52, %s1471_s13  ;;  %549 = vrot.lane.b32.xlu0 %v522_v62, %s1471_s13 }
  0xdf   :  { %v576_v3 = vpop.permute.xlu1 %575  ;;  %v536_v7 = vpop.permute.xlu0 %535 }
  0xe0   :  { %v719_v9 = vsel %vm714_vm14, %v704_v17, %v576_v3 }
  0xe1   :  { %593 = vrot.lane.b32.xlu1 %v1967_v0, %s1472_s24  ;;  %591 = vrot.lane.b32.xlu0 %v1939_v31, %s1472_s24  ;;  %v705_v0 = vsel %vm699_vm13, %v690_v19, %v536_v7 }
  0xe2   :  { %1321 = vmatprep.mubr.msk.f32.mxu0 %vm741_vm15, %v719_v9 }
  0xe3   :  { %v321_v16 = vpop.permute.xlu1 %320  ;;  %v104_v2 = vpop.permute.xlu0 %103 }
  0xe4   :  { %v662_v60 = vsel %vm654_vm10, %v647_v50, %v321_v16  ;;  %v618_v59 = vsel %vm609_vm7, %v1701_v39, %v104_v2 }
  0xe7   :  { %v578_v20 = vpop.permute.xlu1 %577  ;;  %v392_v21 = vpop.permute.xlu0 %391 }
  0xe8   :  { %v720_v35 = vsel %vm714_vm14, %v705_v0, %v578_v20  ;;  %v676_v45 = vsel %vm669_vm11, %v661_v44, %v392_v21 }
  0xe9   :  { %1322 = vmatmul.mubr.msk.f32.gmra.mrb[4].mxu0 %vm741_vm15, %v720_v35 }
  0xeb   :  { %v177_v30 = vpop.permute.xlu1 %176  ;;  %v106_v22 = vpop.permute.xlu0 %105 }
  0xec   :  { %v633_v17 = vsel %vm624_vm8, %v618_v59, %v177_v30  ;;  %v619_v39 = vsel %vm609_vm7, %v1744_v5, %v106_v22 }
  0xef   :  { %v465_v1 = vpop.permute.xlu1 %464  ;;  %v394_v23 = vpop.permute.xlu0 %393 }
  0xf0   :  { %v691_v48 = vsel %vm684_vm12, %v676_v45, %v465_v1  ;;  %v677_v54 = vsel %vm669_vm11, %v662_v60, %v394_v23 }
  0xf3   :  { %v250_v28 = vpop.permute.xlu1 %249  ;;  %v179_v57 = vpop.permute.xlu0 %178 }
  0xf4   :  { %v648_v3 = vsel %vm639_vm9, %v633_v17, %v250_v28  ;;  %v634_v2 = vsel %vm624_vm8, %v619_v39, %v179_v57 }
  0xf7   :  { %v538_v26 = vpop.permute.xlu1 %537  ;;  %v467_v61 = vpop.permute.xlu0 %466 }
  0xf8   :  { %v706_v25 = vsel %vm699_vm13, %v691_v48, %v538_v26  ;;  %v692_v38 = vsel %vm684_vm12, %v677_v54, %v467_v61 }
  0xfb   :  { %v323_v18 = vpop.permute.xlu1 %322  ;;  %v252_v43 = vpop.permute.xlu0 %251 }
  0xfc   :  { %v663_v24 = vsel %vm654_vm10, %v648_v3, %v323_v18  ;;  %v649_v0 = vsel %vm639_vm9, %v634_v2, %v252_v43 }
  0xff   :  { %v580_v46 = vpop.permute.xlu1 %579  ;;  %v540_v49 = vpop.permute.xlu0 %539 }
 0x100   :  { %v721_v40 = vsel %vm714_vm14, %v706_v25, %v580_v46  ;;  %v707_v37 = vsel %vm699_vm13, %v692_v38, %v540_v49 }
 0x101   :  { %1324 = vmatprep.mubr.msk.f32.mxu0 %vm741_vm15, %v721_v40 }
 0x103   :  { %v325_v33 = vpop.permute.xlu1 %324  ;;  %v108_v42 = vpop.permute.xlu0 %107 }
 0x104   :  { %v664_v35 = vsel %vm654_vm10, %v649_v0, %v325_v33  ;;  %v620_v44 = vsel %vm609_vm7, %v1761_v14, %v108_v42 }
 0x107   :  { %v582_v11 = vpop.permute.xlu1 %581  ;;  %v396_v32 = vpop.permute.xlu0 %395 }
 0x108   :  { %v722_v6 = vsel %vm714_vm14, %v707_v37, %v582_v11  ;;  %v678_v47 = vsel %vm669_vm11, %v663_v24, %v396_v32 }
 0x109   :  { %1325 = vmatmul.mubr.msk.f32.gmra.mrb[6].mxu0 %vm741_vm15, %v722_v6 }
 0x10b   :  { %v181_v29 = vpop.permute.xlu1 %180  ;;  %v110_v52 = vpop.permute.xlu0 %109 }
 0x10c   :  { %v635_v45 = vsel %vm624_vm8, %v620_v44, %v181_v29  ;;  %v621_v14 = vsel %vm609_vm7, %v1820_v56, %v110_v52 }
 0x10f   :  { %v469_v62 = vpop.permute.xlu1 %468  ;;  %v398_v41 = vpop.permute.xlu0 %397 }
 0x110   :  { %v693_v58 = vsel %vm684_vm12, %v678_v47, %v469_v62  ;;  %v679_v30 = vsel %vm669_vm11, %v664_v35, %v398_v41 }
 0x113   :  { %v254_v63 = vpop.permute.xlu1 %253  ;;  %v183_v55 = vpop.permute.xlu0 %182 }
 0x114   :  { %v650_v48 = vsel %vm639_vm9, %v635_v45, %v254_v63  ;;  %v636_v42 = vsel %vm624_vm8, %v621_v14, %v183_v55 }
 0x117   :  { %v542_v51 = vpop.permute.xlu1 %541  ;;  %v471_v27 = vpop.permute.xlu0 %470 }
 0x118   :  { %v708_v16 = vsel %vm699_vm13, %v693_v58, %v542_v51  ;;  %v694_v1 = vsel %vm684_vm12, %v679_v30, %v471_v27 }
 0x11b   :  { %v327_v7 = vpop.permute.xlu1 %326  ;;  %v256_v9 = vpop.permute.xlu0 %255 }
 0x11c   :  { %v665_v49 = vsel %vm654_vm10, %v650_v48, %v327_v7  ;;  %v651_v54 = vsel %vm639_vm9, %v636_v42, %v256_v9 }
 0x11f   :  { %v584_v12 = vpop.permute.xlu1 %583  ;;  %v544_v53 = vpop.permute.xlu0 %543 }
 0x120   :  { %v723_v19 = vsel %vm714_vm14, %v708_v16, %v584_v12  ;;  %v709_v23 = vsel %vm699_vm13, %v694_v1, %v544_v53 }
 0x121   :  { %1327 = vmatprep.mubr.msk.f32.mxu0 %vm741_vm15, %v723_v19 }
 0x123   :  { %v329_v20 = vpop.permute.xlu1 %328  ;;  %v112_v21 = vpop.permute.xlu0 %111 }
 0x124   :  { %v666_v11 = vsel %vm654_vm10, %v651_v54, %v329_v20  ;;  %v622_v55 = vsel %vm609_vm7, %v1846_v8, %v112_v21  ;;  %v2212_v20 = vld [vmem:[%s2295_s2] ss:$0 sm:$0xff] }
 0x127   :  { %v586_v28 = vpop.permute.xlu1 %585  ;;  %v400_v26 = vpop.permute.xlu0 %399 }
 0x128   :  { %v724_v5 = vsel %vm714_vm14, %v709_v23, %v586_v28  ;;  %v680_v40 = vsel %vm669_vm11, %v665_v49, %v400_v26 }
 0x129   :  { %1328 = vmatmul.mubr.msk.f32.gmra.mrb[8].mxu0 %vm741_vm15, %v724_v5  ;;  %v1475_v5 = vmov 0.0  }
 0x12a   :  { %1350 = vmatprep.mubr.msk.f32.mxu1 %vm1474_vm0, %v1475_v5 }
 0x12b   :  { %v185_v22 = vpop.permute.xlu1 %184  ;;  %v114_v57 = vpop.permute.xlu0 %113 }
 0x12c   :  { %v623_v51 = vsel %vm609_vm7, %v1939_v31, %v114_v57  ;;  %v637_v27 = vsel %vm624_vm8, %v622_v55, %v185_v22 }
 0x12f   :  { %v473_v61 = vpop.permute.xlu1 %472  ;;  %v402_v34 = vpop.permute.xlu0 %401 }
 0x130   :  { %v695_v4 = vsel %vm684_vm12, %v680_v40, %v473_v61  ;;  %v681_v32 = vsel %vm669_vm11, %v666_v11, %v402_v34 }
 0x133   :  { %v258_v13 = vpop.permute.xlu1 %257  ;;  %v187_v10 = vpop.permute.xlu0 %186 }
 0x134   :  { %v638_v59 = vsel %vm624_vm8, %v623_v51, %v187_v10  ;;  %v652_v17 = vsel %vm639_vm9, %v637_v27, %v258_v13 }
 0x137   :  { %v546_v18 = vpop.permute.xlu1 %545  ;;  %v475_v43 = vpop.permute.xlu0 %474 }
 0x138   :  { %v710_v15 = vsel %vm699_vm13, %v695_v4, %v546_v18  ;;  %v696_v6 = vsel %vm684_vm12, %v681_v32, %v475_v43 }
 0x13b   :  { %v331_v25 = vpop.permute.xlu1 %330  ;;  %v260_v46 = vpop.permute.xlu0 %259 }
 0x13c   :  { %v653_v3 = vsel %vm639_vm9, %v638_v59, %v260_v46  ;;  %v667_v24 = vsel %vm654_vm10, %v652_v17, %v331_v25 }
 0x13f   :  { %v588_v50 = vpop.permute.xlu1 %587  ;;  %v548_v33 = vpop.permute.xlu0 %547 }
 0x140   :  { %v725_v60 = vsel %vm714_vm14, %v710_v15, %v588_v50  ;;  %v711_v29 = vsel %vm699_vm13, %v696_v6, %v548_v33  ;;  %v936_v33 = vld [vmem:[%s2296_s3] sm:$0x3f] }
 0x141   :  { %1330 = vmatprep.mubr.msk.f32.mxu0 %vm741_vm15, %v725_v60 }
 0x143   :  { %v404_v38 = vpop.permute.xlu1 %403  ;;  %v333_v37 = vpop.permute.xlu0 %332 }
 0x144   :  { %v668_v47 = vsel %vm654_vm10, %v653_v3, %v333_v37  ;;  %v682_v58 = vsel %vm669_vm11, %v667_v24, %v404_v38  ;;  %v1128_v24 = vld [vmem:[%s2297_s4] sm:$0xff] }
 0x147   :  { %v406_v62 = vpop.permute.xlu1 %405  ;;  %v590_v41 = vpop.permute.xlu0 %589 }
 0x148   :  { %v726_v56 = vsel %vm714_vm14, %v711_v29, %v590_v41  ;;  %v683_v8 = vsel %vm669_vm11, %v668_v47, %v406_v62  ;;  %v1129_v47 = vld [vmem:[%s2297_s4 + $0x8] sm:$0xff] }
 0x149   :  { %1331 = vmatmul.mubr.msk.f32.gmra.mrb[10].mxu0 %vm741_vm15, %v726_v56 }
 0x14b   :  { %v479_v52 = vpop.permute.xlu1 %478  ;;  %v477_v63 = vpop.permute.xlu0 %476 }
 0x14c   :  { %v698_v31 = vsel %vm684_vm12, %v683_v8, %v479_v52  ;;  %v697_v16 = vsel %vm684_vm12, %v682_v58, %v477_v63  ;;  %v1130_v58 = vld [vmem:[%s2297_s4 + $0x10] sm:$0xff]  ;;  %v1412_v8 = vpack.c.bf16 %v1129_v47, %v1128_v24 }
 0x14e   :  { %1413 = vmatpush3.bf16.msra.mxu0 %v1412_v8 }
 0x14f   :  { %v552_v7 = vpop.permute.xlu1 %551  ;;  %v550_v9 = vpop.permute.xlu0 %549  ;;  %1414 = vmatprep.subr.bf16.mxu0 %v1473_v36 }
 0x150   :  { %v713_v12 = vsel %vm699_vm13, %v698_v31, %v552_v7  ;;  %v712_v53 = vsel %vm699_vm13, %v697_v16, %v550_v9  ;;  %v1131_v31 = vld [vmem:[%s2297_s4 + $0x18] sm:$0xff] }
 0x151   :  { %v1415_v16 = vpack.c.bf16 %v1131_v31, %v1130_v58 }
 0x153   :  { %v594_v19 = vpop.permute.xlu1 %593  ;;  %v592_v39 = vpop.permute.xlu0 %591  ;;  %1416 = vmatpush3.bf16.msra.mxu0 %v1415_v16 }
 0x154   :  { %v728_v2 = vsel %vm714_vm14, %v713_v12, %v594_v19  ;;  %v727_v0 = vsel %vm714_vm14, %v712_v53, %v592_v39  ;;  %1417 = vmatprep.subr.bf16.mxu0 %v1473_v36 }
 0x155   :  { %1333 = vmatprep.mubr.msk.f32.mxu0 %vm741_vm15, %v727_v0 }
 0x156   :  { %1334 = vmatmul.mubr.msk.f32.gmra.mrb[12].mxu0 %vm741_vm15, %v728_v2 }
 0x157   :  { %1382 = vmatprep.mubr.msk.f32.mxu0 %vm1474_vm0, %v1475_v5 }
 0x17d   :  { %v1317_v21 = vpop.f32.mrb[0].mxu0 }
 0x17e   :  { %v859_v35 = vadd.f32 %v1317_v21, %v2212_v20  ;;  %v853_v30 = vpop.f32.mrb[1].mxu0  ;;  %v1133_v21 = vld [vmem:[%s2297_s4 + $0x28] sm:$0xff] }
 0x17f   :  { %v854_v1 = vadd.f32 %v2212_v20, %v853_v30 }
 0x180   :  { %v923_v23 = vmul.f32 %v859_v35, %v859_v35 }
 0x181   :  { %v922_v28 = vmul.f32 %v854_v1, %v854_v1 }
 0x183   :  { %v1394_v26 = vpack.c.bf16 %v923_v23, %v922_v28 }
 0x185   :  { %1395 = vmatpush3.bf16.msra.mxu1 %v1394_v26 }
 0x186   :  { %1396 = vmatprep.subr.bf16.mxu1 %v1473_v36 }
 0x19d   :  { %v1320_v22 = vpop.f32.mrb[2].mxu0 }
 0x19e   :  { %v869_v57 = vadd.f32 %v1320_v22, %v2212_v20  ;;  %v863_v61 = vpop.f32.mrb[3].mxu0 }
 0x19f   :  { %v864_v34 = vadd.f32 %v2212_v20, %v863_v61 }
 0x1a0   :  { %v925_v13 = vmul.f32 %v869_v57, %v869_v57 }
 0x1a1   :  { %v924_v10 = vmul.f32 %v864_v34, %v864_v34 }
 0x1a3   :  { %v1397_v18 = vpack.c.bf16 %v925_v13, %v924_v10 }
 0x1a5   :  { %1398 = vmatpush3.bf16.msra.mxu1 %v1397_v18 }
 0x1a6   :  { %1399 = vmatprep.subr.bf16.mxu1 %v1473_v36 }
 0x1bc   :  { %v1323_v43 = vpop.f32.mrb[4].mxu0 }
 0x1bd   :  { %v879_v44 = vadd.f32 %v1323_v43, %v2212_v20  ;;  %v873_v45 = vpop.f32.mrb[5].mxu0 }
 0x1be   :  { %v874_v48 = vadd.f32 %v2212_v20, %v873_v45 }
 0x1bf   :  { %v927_v25 = vmul.f32 %v879_v44, %v879_v44 }
 0x1c0   :  { %v926_v46 = vmul.f32 %v874_v48, %v874_v48 }
 0x1c2   :  { %v1400_v49 = vpack.c.bf16 %v927_v25, %v926_v46 }
 0x1c4   :  { %1401 = vmatpush3.bf16.msra.mxu1 %v1400_v49 }
 0x1c5   :  { %1348 = vmatprep.subr.mxu1 %v1475_v5 }
 0x1dc   :  { %v1326_v40 = vpop.f32.mrb[6].mxu0 }
 0x1dd   :  { %v883_v4 = vpop.f32.mrb[7].mxu0  ;;  %v889_v60 = vadd.f32 %v1326_v40, %v2212_v20 }
 0x1de   :  { %v884_v15 = vadd.f32 %v2212_v20, %v883_v4 }
 0x1df   :  { %v929_v38 = vmul.f32 %v889_v60, %v889_v60 }
 0x1e0   :  { %v928_v50 = vmul.f32 %v884_v15, %v884_v15 }
 0x1e2   :  { %1349 = vmatpush3.msra.mxu1 %v928_v50 }
 0x1e3   :  { %1402 = vmatprep.subr.bf16.mxu1 %v1473_v36  ;;  %1351 = vmatmul.mubr.msk.f32.vlgmr.msra.gmra.mrb[0].mxu1 %vm937_vm1, %v936_v33 }
 0x1e4   :  { %1367 = vmatprep.mubr.msk.f32.mxu1 %vm1474_vm0, %v1475_v5 }
 0x1fc   :  { %v1329_v14 = vpop.f32.mrb[8].mxu0 }
 0x1fd   :  { %v893_v42 = vpop.f32.mrb[9].mxu0  ;;  %v899_v32 = vadd.f32 %v1329_v14, %v2212_v20 }
 0x1fe   :  { %v894_v54 = vadd.f32 %v2212_v20, %v893_v42 }
 0x1ff   :  { %v931_v41 = vmul.f32 %v899_v32, %v899_v32 }
 0x200   :  { %v930_v37 = vmul.f32 %v894_v54, %v894_v54 }
 0x202   :  { %v1403_v11 = vpack.c.bf16 %v930_v37, %v929_v38  ;;  %v1261_v38 = vld [vmem:[%s2298_s5] ss:$0 sm:$0xff] }
 0x204   :  { %1404 = vmatpush3.bf16.msra.mxu1 %v1403_v11 }
 0x205   :  { %1405 = vmatprep.subr.bf16.mxu1 %v1473_v36 }
 0x21c   :  { %v1332_v6 = vpop.f32.mrb[10].mxu0 }
 0x21d   :  { %v903_v29 = vpop.f32.mrb[11].mxu0  ;;  %v909_v63 = vadd.f32 %v1332_v6, %v2212_v20 }
 0x21e   :  { %v904_v62 = vadd.f32 %v2212_v20, %v903_v29 }
 0x21f   :  { %v933_v59 = vmul.f32 %v909_v63, %v909_v63 }
 0x220   :  { %v932_v56 = vmul.f32 %v904_v62, %v904_v62 }
 0x222   :  { %v1406_v52 = vpack.c.bf16 %v932_v56, %v931_v41 }
 0x224   :  { %1407 = vmatpush3.bf16.msra.mxu1 %v1406_v52 }
 0x225   :  { %1408 = vmatprep.subr.bf16.mxu1 %v1473_v36 }
 0x229   :  { %v1335_v55 = vpop.f32.mrb[12].mxu0 }
 0x22a   :  { %v913_v51 = vpop.f32.mrb[13].mxu0  ;;  %v919_v3 = vadd.f32 %v1335_v55, %v2212_v20 }
 0x22b   :  { %v914_v27 = vadd.f32 %v2212_v20, %v913_v51  ;;  %v1132_v20 = vld [vmem:[%s2297_s4 + $0x20] sm:$0xff]  ;;  %s1476_s4 = smov 40  }
 0x22c   :  { %v935_v9 = vmul.f32 %v919_v3, %v919_v3  ;;  %v1418_v35 = vpack.c.bf16 %v1133_v21, %v1132_v20 }
 0x22d   :  { %v934_v17 = vmul.f32 %v914_v27, %v914_v27 }
 0x22e   :  { %1419 = vmatpush3.bf16.msra.mxu0 %v1418_v35 }
 0x22f   :  { %v1409_v7 = vpack.c.bf16 %v934_v17, %v933_v59 }
 0x231   :  { %1410 = vmatpush3.bf16.msra.mxu1 %v1409_v7 }
 0x232   :  { %1365 = vmatprep.subr.mxu1 %v1475_v5 }
 0x235   :  { %1366 = vmatpush3.msra.mxu1 %v935_v9 }
 0x236   :  { %1368 = vmatmul.mubr.msk.f32.vlgmr.msra.gmra.mrb[2].mxu1 %vm937_vm1, %v936_v33 }
 0x2b6   :  { %v1007_v12 = vpop.f32.mrb[0].mxu1 }
 0x2b7   :  { %v1352_v53 = vpop.f32.mrb[1].mxu1  ;;  %v1081_v19 = vmax.f32 %v1007_v12, 1e-06 }
 0x2b9   :  { %1433 = vlog2.f32 %v1081_v19 }
 0x2c3   :  { %v1434_v30 = vpop.eup %1433 }
 0x2c4   :  { %v1084_v36 = vmul.f32 0.6931472, %v1434_v30 }
 0x2c6   :  { %v1093_v28 = vrot.slane %v1084_v36, 1  ;;  %v1098_v5 = vrot.slane %v1084_v36, 2  ;;  %v1104_v13 = vrot.slane %v1084_v36, 3  ;;  %v1110_v44 = vrot.slane %v1084_v36, 4 }
 0x2c7   :  { %v1116_v25 = vrot.slane %v1084_v36, 5 }
 0x309   :  { %v1077_v39 = vpop.f32.mrb[2].mxu1 }
 0x30a   :  { %v1082_v2 = vmax.f32 %v1077_v39, 1e-06  ;;  %v1369_v0 = vpop.f32.mrb[3].mxu1 }
 0x30c   :  { %1435 = vlog2.f32 %v1082_v2 }
 0x316   :  { %v1436_v1 = vpop.eup %1435 }
 0x317   :  { %v1086_v23 = vmul.f32 0.6931472, %v1436_v1 }
 0x319   :  { %v1094_v26 = vsel %vm1090_vm2, %v1086_v23, %v1093_v28  ;;  %v1099_v22 = vrot.slane %v1086_v23, 1  ;;  %v1105_v57 = vrot.slane %v1086_v23, 2  ;;  %v1089_v61 = vrot.slane %v1086_v23, 7 }
 0x31a   :  { %1095 = vrot.lane.b32.xlu0 %v1094_v26, %s1465_s27  ;;  %v1111_v10 = vrot.slane %v1086_v23, 3  ;;  %v1117_v45 = vrot.slane %v1086_v23, 4 }
 0x31b   :  { %v1100_v34 = vsel %vm1090_vm2, %v1099_v22, %v1098_v5  ;;  %v1091_v18 = vsel %vm1090_vm2, %v1089_v61, %v1084_v36  ;;  %v1106_v43 = vsel %vm1090_vm2, %v1105_v57, %v1104_v13 }
 0x31c   :  { %1101 = vrot.lane.b32.xlu1 %v1100_v34, %s1468_s10  ;;  %v1112_v48 = vsel %vm1090_vm2, %v1111_v10, %v1110_v44  ;;  %v1118_v46 = vsel %vm1090_vm2, %v1117_v45, %v1116_v25 }
 0x31e   :  { %1107 = vrot.lane.b32.xlu0 %v1106_v43, %s1470_s12  ;;  %s1477_s12 = smov [#allocation2]  }
 0x31f   :  { %s1235_s5 = sshll.u32 %s1477_s12, 4  ;;  %s1236_s5 = int_to_ptr.vmem [resolvable:$true] %s1235_s5 }
 0x320   :  { %1113 = vrot.lane.b32.xlu1 %v1112_v48, %s1472_s24  ;;  %s1441_s24 = scalar_lea.vmem %s1236_s5, 32  ;;  %p1446_p1 = scmp.lt.s32.totalorder %s1236_s5, %s1236_s5 }
 0x321   :  { %p1442_p0 = scmp.ne.s32.totalorder %s1236_s5, %s1441_s24  ;;  %p1447_p2 = scmp.lt.s32.totalorder %s1441_s24, %s1441_s24 }
 0x322   :  { %1119 = vrot.lane.b32.xlu0 %v1118_v46, %s1476_s4 }
 0x323   :  { %p1448_p3 = por %p1447_p2, %p1446_p1 }
 0x325   :  { %p1449_p4 = pnand %p1448_p3, %p1442_p0 }
 0x38c   :  { %v1096_v49 = vpop.permute.xlu0 %1095 }
 0x38d   :  { %v1122_v40 = vsel %vm624_vm8, %v1091_v18, %v1096_v49 }
 0x38e   :  { %v1102_v4 = vpop.permute.xlu1 %1101 }
 0x38f   :  { %v1123_v15 = vsel %vm654_vm10, %v1122_v40, %v1102_v4 }
 0x390   :  { %v1108_v50 = vpop.permute.xlu0 %1107 }
 0x391   :  { %v1124_v33 = vsel %vm684_vm12, %v1123_v15, %v1108_v50 }
 0x392   :  { %v1114_v60 = vpop.permute.xlu1 %1113 }
 0x393   :  { %v1125_v14 = vsel %vm714_vm14, %v1124_v33, %v1114_v60 }
 0x394   :  { %v1120_v42 = vpop.permute.xlu0 %1119 }
 0x395   :  { %v1127_v54 = vsel %vm1126_vm3, %v1125_v14, %v1120_v42 }
 0x396   :  { %1383 = vmatmul.mubr.msk.f32.vlgmr.msra.gmra.mrb[14].mxu0 %vm1141_vm4, %v1127_v54 }
 0x469   :  { %v1211_v37 = vpop.f32.mrb[14].mxu0 }
 0x46a   :  { %v1212_v11 = vadd.f32 %v1261_v38, %v1211_v37  ;;  %v1384_v32 = vpop.f32.mrb[15].mxu0 }
 0x46c   :  { %v1216_v6 = vsel %vm1215_vm5, %v1212_v11, -inf }
 0x46d   :  { %1217 = vmax.xlane.f32.xlu1 %v1216_v6 }
 0x4fa   :  { %v1218_v29 = vpop.xlane.xlu1 %1217 }
 0x4fb   :  { %v1219_v62 = vsub.f32 %v1212_v11, %v1218_v29 }
 0x4fd   :  { %v1220_v41 = vmul.f32 1.442695, %v1219_v62 }
 0x4ff   :  { %1437 = vpow2.f32 %v1220_v41 }
 0x509   :  { %v1438_v56 = vpop.eup %1437 }
 0x50a   :  { %v1222_v52 = vsel %vm1215_vm5, %v1438_v56, 0.0 }
 0x50b   :  { %1223 = vadd.xlane.f32.xlu0 %v1222_v52 }
 0x598   :  { %v1224_v63 = vpop.xlane.xlu0 %1223 }
 0x599   :  { %1439 = vlog2.f32 %v1224_v63 }
 0x5a3   :  { %v1440_v55 = vpop.eup %1439 }
 0x5a4   :  { %v1226_v51 = vmul.f32 0.6931472, %v1440_v55 }
 0x5a6   :  { %v1227_v27 = vsub.f32 %v1219_v62, %v1226_v51 }
 0x5a8   :  { %1228 = vst.msk [vmem:[#allocation2] sm:$0x3] %vm1215_vm5, %v1227_v27 }
 0x5a9   :  { %1452 = shalt.err (!%p1449_p4)
}
 0x5aa   :  { %s1453_s23 = scalar_lea.hbm %s2299_s6, 32 }
 0x5ab   :  { %p1454_p5 = scmp.ne.s32.totalorder %s2299_s6, %s1453_s23  ;;  %p1457_p6 = scmp.lt.u32.totalorder %s1453_s23, %s2299_s6 }
 0x5ad   :  { %p1459_p7 = pnand %p1457_p6, %p1454_p5 }
 0x5af   :  { %1462 = shalt.err (!%p1459_p7)
}
 0x5b0   :  { %1238 = dma.vmem_to_hbm [thread:$0]  %s1236_s5, 32, %s2299_s6, [#allocation3]  }
 0x5b1   :  { %1463 = dma.done.wait [#allocation3], 32  }
 0x5b2   :  { %1464 = vsyncadd [#allocation3], 4294967264 }
 0x5b3   :  { %1242 = vsyncpa [#allocation3], 1 }

</bundles_post_ra>
